<compile_context>
chip_gen: v7x
topology: tpu7x:2x2x1
jax: 0.10.0
libtpu: 0.0.40
codegen_flags: <defaults>
</compile_context>

<pallas_src>
import jax
import jax.numpy as jnp
import numpy as np
from jax.experimental import pallas as pl
from jax.experimental.pallas import tpu as pltpu


def conv1x3_tanh_kernel(x_ref, w_ref, o_ref):
    # x_ref: (N, Cpad, S)     channel-padded NCHW input, spatial flat on lanes
    # w_ref: (Cout, KW*Cpad)  taps-stacked weight
    # o_ref: (N, Cout, S)     flat NCHW output (lane-dense full-width stores)
    n_img, cpad, s = x_ref.shape
    cout, kc = w_ref.shape
    kw_taps = kc // cpad

    w = w_ref[...]                          # (Cout, KW*Cpad), loaded once
    for n in range(n_img):                  # static unroll over the tiny batch
        xn = x_ref[n]                       # (Cpad, S)
        # Stack the KW taps along the sublane axis: row kw*Cpad + c holds
        # channel c shifted left by kw lanes (wrapped values only land in
        # columns the wrapper discards).  jnp.roll with a static shift lowers
        # to a lane slice + concat; the Cpad-row blocks concat sublane-aligned.
        taps = [xn] + [jnp.roll(xn, shift=-k, axis=-1)
                       for k in range(1, kw_taps)]
        x_stacked = jnp.concatenate(taps, axis=0)        # (KW*Cpad, S)
        # Single fused MXU pass over the whole contraction (depth KW*Cpad).
        acc = jnp.dot(w, x_stacked, preferred_element_type=jnp.float32)
        # One full-width, unmasked store per image.
        o_ref[n] = jnp.tanh(acc).astype(o_ref.dtype)


def model_tanh_forward(x_nchw, weight_oihw):
    """x_nchw: (N, Cin, H, W) float32; weight_oihw: (Cout, Cin, 1, KW)."""
    N, Cin, H, W = x_nchw.shape
    Cout, Cin_w, KH, KW = weight_oihw.shape
    assert KH == 1 and Cin_w == Cin and W >= KW
    Wout = W - KW + 1
    S = H * W
    Cpad = ((Cin + 7) // 8) * 8             # 15 -> 16, sublane aligned

    # Free reshape (merge spatial dims onto lanes) + tiny channel zero-pad.
    x_flat = x_nchw.reshape(N, Cin, S)
    x_pad = jnp.pad(x_flat, ((0, 0), (0, Cpad - Cin), (0, 0)))

    # Pack the weight as (Cout, KW*Cpad): column kw*Cpad + c <-> tap kw, chan c.
    w = jnp.transpose(weight_oihw[:, :, 0, :], (0, 2, 1))      # (Cout, KW, Cin)
    w = jnp.pad(w, ((0, 0), (0, 0), (0, Cpad - Cin)))          # (Cout, KW, Cpad)
    w_packed = w.reshape(Cout, KW * Cpad)

    ce = pl.CostEstimate(
        flops=2 * N * Cout * KW * Cpad * S,
        transcendentals=N * Cout * S,
        bytes_accessed=4 * (N * Cpad * S + Cout * KW * Cpad + N * Cout * S),
    )

    out_flat = pl.pallas_call(
        conv1x3_tanh_kernel,
        out_shape=jax.ShapeDtypeStruct((N, Cout, S), x_nchw.dtype),
        in_specs=[
            pl.BlockSpec(memory_space=pltpu.MemorySpace.VMEM),
            pl.BlockSpec(memory_space=pltpu.MemorySpace.VMEM),
        ],
        out_specs=pl.BlockSpec(memory_space=pltpu.MemorySpace.VMEM),
        cost_estimate=ce,
    )(x_pad, w_packed)

    # Free split of the flat spatial axis back to (H, W), then drop the KW-1
    # straddle/wrap columns per row.  Output is NCHW, matching PyTorch.
    return out_flat.reshape(N, Cout, H, W)[:, :, :, :Wout]


if __name__ == "__main__":
    key = jax.random.PRNGKey(0)
    kx, kw_key = jax.random.split(key)

    # Module implies Cin=15, Cout=20, kernel (1,3), no bias.
    N, Cin, H, W = 2, 15, 8, 18
    Cout, KW = 20, 3

    x = jax.random.normal(kx, (N, Cin, H, W), dtype=jnp.float32)
    # Deterministic weight init (uniform, roughly PyTorch's fan-in scale).
    fan_in = Cin * 1 * KW
    bound = 1.0 / np.sqrt(fan_in)
    weight = jax.random.uniform(kw_key, (Cout, Cin, 1, KW), dtype=jnp.float32,
                                minval=-bound, maxval=bound)

    out = jax.block_until_ready(model_tanh_forward(x, weight))

    # Cross-check against XLA's conv + tanh.
    ref = jnp.tanh(jax.lax.conv_general_dilated(
        x, weight, window_strides=(1, 1), padding="VALID",
        dimension_numbers=("NCHW", "OIHW", "NCHW"),
        precision=jax.lax.Precision.HIGHEST))
    np.testing.assert_allclose(np.asarray(out), np.asarray(ref),
                               rtol=1e-5, atol=1e-5)

    assert out.shape == (N, Cout, H, W - KW + 1)
    print("KERNEL_OK")
</pallas_src>

<mosaic_0001>
module attributes {stable_mosaic.version = 11 : i64} {
  func.func @conv1x3_tanh_kernel(%arg0: memref<2x16x144xf32, #tpu.memory_space<vmem>>, %arg1: memref<20x48xf32, #tpu.memory_space<vmem>>, %arg2: memref<2x20x144xf32, #tpu.memory_space<vmem>>) attributes {dimension_semantics = [], scalar_prefetch = 0 : i64, scratch_operands = 0 : i64, tpu.core_type = #tpu.core_type<tc>} {
    %c0 = arith.constant 0 : index
    %c0_0 = arith.constant 0 : index
    %0 = vector.load %arg1[%c0, %c0_0] : memref<20x48xf32, #tpu.memory_space<vmem>>, vector<20x48xf32>
    %c0_1 = arith.constant 0 : index
    %c0_2 = arith.constant 0 : index
    %c0_3 = arith.constant 0 : index
    %1 = vector.load %arg0[%c0_1, %c0_2, %c0_3] : memref<2x16x144xf32, #tpu.memory_space<vmem>>, vector<1x16x144xf32>
    %2 = vector.shape_cast %1 : vector<1x16x144xf32> to vector<16x144xf32>
    %3 = vector.extract_strided_slice %2 {offsets = [0, 1], sizes = [16, 143], strides = [1, 1]} : vector<16x144xf32> to vector<16x143xf32>
    %4 = vector.extract_strided_slice %2 {offsets = [0, 0], sizes = [16, 1], strides = [1, 1]} : vector<16x144xf32> to vector<16x1xf32>
    %5 = tpu.concatenate %3, %4 in 1 : vector<16x143xf32>, vector<16x1xf32> -> vector<16x144xf32>
    %6 = vector.extract_strided_slice %2 {offsets = [0, 2], sizes = [16, 142], strides = [1, 1]} : vector<16x144xf32> to vector<16x142xf32>
    %7 = vector.extract_strided_slice %2 {offsets = [0, 0], sizes = [16, 2], strides = [1, 1]} : vector<16x144xf32> to vector<16x2xf32>
    %8 = tpu.concatenate %6, %7 in 1 : vector<16x142xf32>, vector<16x2xf32> -> vector<16x144xf32>
    %9 = tpu.concatenate %2, %5, %8 in 0 : vector<16x144xf32>, vector<16x144xf32>, vector<16x144xf32> -> vector<48x144xf32>
    %cst = arith.constant dense<0.000000e+00> : vector<20x144xf32>
    %10 = tpu.matmul %0, %9, %cst {dimension_numbers = #tpu.dot_dimension_numbers<[1], [0], [0], [1], [0, 0, 1, 1], [], []>} : vector<20x48xf32>, vector<48x144xf32>, vector<20x144xf32> -> vector<20x144xf32>
    %11 = math.tanh %10 : vector<20x144xf32>
    %c0_4 = arith.constant 0 : index
    %c0_5 = arith.constant 0 : index
    %c0_6 = arith.constant 0 : index
    %12 = vector.load %arg2[%c0_4, %c0_5, %c0_6] : memref<2x20x144xf32, #tpu.memory_space<vmem>>, vector<1x20x144xf32>
    %13 = vector.shape_cast %12 : vector<1x20x144xf32> to vector<20x144xf32>
    %14 = vector.shape_cast %11 : vector<20x144xf32> to vector<1x20x144xf32>
    tpu.vector_store %arg2[%c0_4, %c0_5, %c0_6], %14 {strides = array<i32>} : memref<2x20x144xf32, #tpu.memory_space<vmem>>, vector<1x20x144xf32>,
    %c1 = arith.constant 1 : index
    %c0_7 = arith.constant 0 : index
    %c0_8 = arith.constant 0 : index
    %15 = vector.load %arg0[%c1, %c0_7, %c0_8] : memref<2x16x144xf32, #tpu.memory_space<vmem>>, vector<1x16x144xf32>
    %16 = vector.shape_cast %15 : vector<1x16x144xf32> to vector<16x144xf32>
    %17 = vector.extract_strided_slice %16 {offsets = [0, 1], sizes = [16, 143], strides = [1, 1]} : vector<16x144xf32> to vector<16x143xf32>
    %18 = vector.extract_strided_slice %16 {offsets = [0, 0], sizes = [16, 1], strides = [1, 1]} : vector<16x144xf32> to vector<16x1xf32>
    %19 = tpu.concatenate %17, %18 in 1 : vector<16x143xf32>, vector<16x1xf32> -> vector<16x144xf32>
    %20 = vector.extract_strided_slice %16 {offsets = [0, 2], sizes = [16, 142], strides = [1, 1]} : vector<16x144xf32> to vector<16x142xf32>
    %21 = vector.extract_strided_slice %16 {offsets = [0, 0], sizes = [16, 2], strides = [1, 1]} : vector<16x144xf32> to vector<16x2xf32>
    %22 = tpu.concatenate %20, %21 in 1 : vector<16x142xf32>, vector<16x2xf32> -> vector<16x144xf32>
    %23 = tpu.concatenate %16, %19, %22 in 0 : vector<16x144xf32>, vector<16x144xf32>, vector<16x144xf32> -> vector<48x144xf32>
    %cst_9 = arith.constant dense<0.000000e+00> : vector<20x144xf32>
    %24 = tpu.matmul %0, %23, %cst_9 {dimension_numbers = #tpu.dot_dimension_numbers<[1], [0], [0], [1], [0, 0, 1, 1], [], []>} : vector<20x48xf32>, vector<48x144xf32>, vector<20x144xf32> -> vector<20x144xf32>
    %25 = math.tanh %24 : vector<20x144xf32>
    %c1_10 = arith.constant 1 : index
    %c0_11 = arith.constant 0 : index
    %c0_12 = arith.constant 0 : index
    %26 = vector.load %arg2[%c1_10, %c0_11, %c0_12] : memref<2x20x144xf32, #tpu.memory_space<vmem>>, vector<1x20x144xf32>
    %27 = vector.shape_cast %26 : vector<1x20x144xf32> to vector<20x144xf32>
    %28 = vector.shape_cast %25 : vector<20x144xf32> to vector<1x20x144xf32>
    tpu.vector_store %arg2[%c1_10, %c0_11, %c0_12], %28 {strides = array<i32>} : memref<2x20x144xf32, #tpu.memory_space<vmem>>, vector<1x20x144xf32>,
    return
  }
}

</mosaic_0001>

<bundles_post_ra>
// kernel: tpu_custom_call.1
= control target key start
LH: loop header
LB: loop body
LE: loop exit
PB: predicated region body
PF: predicated region fallthrough
CT: control target
= control target key end

     0   :  { %7 = vsyncpa [#allocation3], 0  ;;  %s639_s0 = inlined_call_operand.hbm [shape: f32[2,16,144], index: 0, kind: input, shape index: {}]   ;;  %s640_s1 = inlined_call_operand.hbm [shape: f32[20,48], index: 1, kind: input, shape index: {}]   ;;  %s641_s2 = inlined_call_operand.vmem [shape: f32[2,20,144], index: 2, kind: output, shape index: {}]  }
   0x1   :  { %8 = vsyncpa [#allocation5], 0  ;;  %s539_s9 = smov [#allocation2]   ;;  %s491_s13 = scalar_lea.hbm %s639_s0, 1024 }
   0x2   :  { %s14_s10 = sshll.u32 %s539_s9, 4  ;;  %p492_p0 = scmp.ne.s32.totalorder %s639_s0, %s491_s13  ;;  %s15_s10 = int_to_ptr.vmem [resolvable:$true] %s14_s10 }
   0x3   :  { %p495_p1 = scmp.lt.u32.totalorder %s491_s13, %s639_s0 }
   0x5   :  { %p497_p2 = pnand %p495_p1, %p492_p0 }
   0x7   :  { %500 = shalt.err (!%p497_p2)
}
   0x8   :  { %s501_s18 = scalar_lea.vmem %s15_s10, 1024  ;;  %p506_p4 = scmp.lt.s32.totalorder %s15_s10, %s15_s10 }
   0x9   :  { %p502_p3 = scmp.ne.s32.totalorder %s15_s10, %s501_s18  ;;  %p507_p5 = scmp.lt.s32.totalorder %s501_s18, %s501_s18 }
   0xb   :  { %p508_p6 = por %p507_p5, %p506_p4 }
   0xd   :  { %p509_p7 = pnand %p508_p6, %p502_p3 }
   0xf   :  { %512 = shalt.err (!%p509_p7)
}
  0x10   :  { %s540_s19 = smov 256   ;;  %s541_s20 = smov 16  }
  0x11   :  { %20 = dma.hbm_to_vmem [thread:$0]  %s639_s0, 1024, %s15_s10, [#allocation3], %s540_s19, %s540_s19, %s541_s20  }
  0x12   :  { %s542_s23 = smov [#allocation4]   ;;  %s513_s27 = scalar_lea.hbm %s640_s1, 384 }
  0x13   :  { %s26_s24 = sshll.u32 %s542_s23, 4  ;;  %p514_p8 = scmp.ne.s32.totalorder %s640_s1, %s513_s27  ;;  %s27_s24 = int_to_ptr.vmem [resolvable:$true] %s26_s24 }
  0x14   :  { %p517_p9 = scmp.lt.u32.totalorder %s513_s27, %s640_s1 }
  0x16   :  { %p519_p10 = pnand %p517_p9, %p514_p8 }
  0x18   :  { %522 = shalt.err (!%p519_p10)
}
  0x19   :  { %s523_s4 = scalar_lea.vmem %s27_s24, 384  ;;  %p528_p12 = scmp.lt.s32.totalorder %s27_s24, %s27_s24 }
  0x1a   :  { %p524_p11 = scmp.ne.s32.totalorder %s27_s24, %s523_s4  ;;  %p529_p13 = scmp.lt.s32.totalorder %s523_s4, %s523_s4 }
  0x1c   :  { %p530_p0 = por %p529_p13, %p528_p12 }
  0x1e   :  { %p531_p1 = pnand %p530_p0, %p524_p11 }
  0x20   :  { %534 = shalt.err (!%p531_p1)
}
  0x21   :  { %s543_s0 = smov 128   ;;  %s544_s5 = smov 8  }
  0x22   :  { %32 = dma.hbm_to_vmem [thread:$0]  %s640_s1, 384, %s27_s24, [#allocation5], %s543_s0, %s543_s0, %s544_s5  }
  0x23   :  { %535 = dma.done.wait [#allocation3], 1024  }
  0x24   :  { %536 = vsyncadd [#allocation3], 4294966272 }
  0x25   :  { %537 = dma.done.wait [#allocation5], 384  }
  0x26   :  { %538 = vsyncadd [#allocation5], 4294966912  ;;  %v207_v0 = vld [vmem:[#allocation2 + $0x28] sm:$0xff]  ;;  %v209_v1 = vld [vmem:[#allocation2 + $0x38] sm:$0xff]  ;;  %s545_s8 = smov 127   ;;  %s546_s1 = smov 15  }
  0x27   :  { %v43_v2 = vld [vmem:[#allocation2 + $0x8] sm:$0xff]  ;;  %v417_v3 = vpack.i.bf16 %v209_v1, %v207_v0  ;;  %v45_v4 = vld [vmem:[#allocation2 + $0x18] sm:$0xff]  ;;  %v206_v5 = vld [vmem:[#allocation2 + $0x20] sm:$0xff]  ;;  %v384_v7 = vpack.c.bf16 %v209_v1, %v207_v0  ;;  %s547_s9 = smov 14   ;;  %s548_s10 = smov 126   ;;  %v549_v16 = vmov 0.0  }
  0x28   :  { %v208_v6 = vld [vmem:[#allocation2 + $0x30] sm:$0xff]  ;;  %v407_v8 = vpack.i.bf16 %v45_v4, %v43_v2  ;;  %v42_v9 = vld [vmem:[#allocation2] sm:$0xff]  ;;  %v372_v13 = vpack.c.bf16 %v45_v4, %v43_v2  ;;  %172 = vmatprep.mubr.f32.mxu0 %v549_v16  ;;  %322 = vmatprep.mubr.f32.mxu1 %v549_v16  ;;  %vm71_vm0 = vcmask 121856   ;;  %vm58_vm1 = vcmask 1039360  }
  0x29   :  { %v44_v10 = vld [vmem:[#allocation2 + $0x10] sm:$0xff]  ;;  %418 = vrot.lane.b32.xlu1 %v417_v3, %s545_s8  ;;  %v422_v11 = vpack.i.bf16 %v208_v6, %v206_v5  ;;  %385 = vmatprep.subr.bf16.mxu1 %v384_v7  ;;  %v386_v15 = vpack.c.bf16 %v208_v6, %v206_v5  ;;  %vm95_vm2 = vcmask 113664   ;;  %vm82_vm3 = vcmask 1031168  }
  0x2a   :  { %408 = vrot.lane.b32.xlu0 %v407_v8, %s545_s8  ;;  %v412_v12 = vpack.i.bf16 %v44_v10, %v42_v9  ;;  %v374_v14 = vpack.c.bf16 %v44_v10, %v42_v9  ;;  %373 = vmatprep.subr.bf16.mxu0 %v372_v13  ;;  %v39_v13 = vld [vmem:[#allocation4] sm:$0xff]  ;;  %vm98_vm4 = vcmask 392192   ;;  %vm198_vm5 = vcmask 130048  }
  0x2b   :  { %387 = vmatpush1.bf16.msra.mxu1 %v386_v15  ;;  %v41_v15 = vld [vmem:[#allocation4 + $0x10] sm:$0xf]  ;;  %vm203_vm6 = vcmask 125952  }
  0x2c   :  { %375 = vmatpush1.bf16.msra.mxu0 %v374_v14  ;;  %v40_v14 = vld [vmem:[#allocation4 + $0x8] sm:$0xff] }
  0x2d   :  { %423 = vrot.lane.b32.xlu1 %v422_v11, %s546_s1 }
  0x2e   :  { %413 = vrot.lane.b32.xlu0 %v412_v12, %s546_s1 }
  0x31   :  { %433 = vrot.lane.b32.xlu1 %v422_v11, %s545_s8 }
  0x32   :  { %428 = vrot.lane.b32.xlu0 %v412_v12, %s545_s8 }
  0x35   :  { %443 = vrot.lane.b32.xlu1 %v412_v12, %s547_s9 }
  0x36   :  { %438 = vrot.lane.b32.xlu0 %v407_v8, %s548_s10 }
  0x39   :  { %453 = vrot.lane.b32.xlu1 %v422_v11, %s547_s9 }
  0x3a   :  { %448 = vrot.lane.b32.xlu0 %v417_v3, %s548_s10 }
  0x3d   :  { %463 = vrot.lane.b32.xlu1 %v422_v11, %s548_s10 }
  0x3e   :  { %458 = vrot.lane.b32.xlu0 %v412_v12, %s548_s10 }
  0x9b   :  { %v419_v17 = vpop.permute.xlu1 %418 }
  0x9c   :  { %v409_v18 = vpop.permute.xlu0 %408  ;;  %v421_v20 = vunpack.i.h.bf16 %v419_v17  ;;  %v420_v21 = vunpack.i.l.bf16 %v419_v17 }
  0x9d   :  { %v411_v25 = vunpack.i.h.bf16 %v409_v18  ;;  %v410_v26 = vunpack.i.l.bf16 %v409_v18 }
  0x9f   :  { %v424_v19 = vpop.permute.xlu1 %423 }
  0xa0   :  { %v426_v22 = vunpack.i.h.bf16 %v424_v19  ;;  %v425_v23 = vunpack.i.l.bf16 %v424_v19  ;;  %v414_v24 = vpop.permute.xlu0 %413 }
  0xa1   :  { %v416_v27 = vunpack.i.h.bf16 %v414_v24  ;;  %v415_v28 = vunpack.i.l.bf16 %v414_v24 }
  0xa2   :  { %v234_v29 = vsel %vm71_vm0, %v420_v21, %v425_v23  ;;  %v235_v30 = vsel %vm71_vm0, %v421_v20, %v426_v22 }
  0xa3   :  { %v434_v31 = vpop.permute.xlu1 %433  ;;  %v72_v32 = vsel %vm71_vm0, %v410_v26, %v415_v28  ;;  %v73_v33 = vsel %vm71_vm0, %v411_v25, %v416_v27  ;;  %v388_v34 = vpack.c.bf16 %v235_v30, %v234_v29 }
  0xa4   :  { %v436_v35 = vunpack.i.h.bf16 %v434_v31  ;;  %v435_v36 = vunpack.i.l.bf16 %v434_v31  ;;  %v429_v37 = vpop.permute.xlu0 %428  ;;  %v376_v38 = vpack.c.bf16 %v73_v33, %v72_v32 }
  0xa5   :  { %v431_v39 = vunpack.i.h.bf16 %v429_v37  ;;  %v430_v40 = vunpack.i.l.bf16 %v429_v37  ;;  %389 = vmatprep.subr.bf16.mxu1 %v388_v34 }
  0xa6   :  { %377 = vmatprep.subr.bf16.mxu0 %v376_v38  ;;  %v222_v41 = vsel %vm58_vm1, %v435_v36, %v420_v21  ;;  %v223_v42 = vsel %vm58_vm1, %v436_v35, %v421_v20 }
  0xa7   :  { %v444_v43 = vpop.permute.xlu1 %443  ;;  %v59_v44 = vsel %vm58_vm1, %v430_v40, %v410_v26  ;;  %v60_v45 = vsel %vm58_vm1, %v431_v39, %v411_v25  ;;  %v390_v46 = vpack.c.bf16 %v223_v42, %v222_v41 }
  0xa8   :  { %v446_v47 = vunpack.i.h.bf16 %v444_v43  ;;  %v445_v48 = vunpack.i.l.bf16 %v444_v43  ;;  %v439_v49 = vpop.permute.xlu0 %438  ;;  %v378_v50 = vpack.c.bf16 %v60_v45, %v59_v44 }
  0xa9   :  { %v441_v51 = vunpack.i.h.bf16 %v439_v49  ;;  %v440_v52 = vunpack.i.l.bf16 %v439_v49  ;;  %391 = vmatpush1.bf16.msra.mxu1 %v390_v46 }
  0xaa   :  { %379 = vmatpush1.bf16.msra.mxu0 %v378_v50 }
  0xab   :  { %v454_v53 = vpop.permute.xlu1 %453  ;;  %v96_v54 = vsel %vm95_vm2, %v440_v52, %v445_v48  ;;  %v97_v55 = vsel %vm95_vm2, %v441_v51, %v446_v47 }
  0xac   :  { %v456_v56 = vunpack.i.h.bf16 %v454_v53  ;;  %v455_v57 = vunpack.i.l.bf16 %v454_v53  ;;  %v449_v58 = vpop.permute.xlu0 %448  ;;  %v380_v59 = vpack.c.bf16 %v97_v55, %v96_v54 }
  0xad   :  { %v451_v60 = vunpack.i.h.bf16 %v449_v58  ;;  %v450_v61 = vunpack.i.l.bf16 %v449_v58 }
  0xae   :  { %381 = vmatprep.subr.bf16.mxu0 %v380_v59 }
  0xaf   :  { %v464_v62 = vpop.permute.xlu1 %463  ;;  %v256_v63 = vsel %vm95_vm2, %v450_v61, %v455_v57  ;;  %v257_v0 = vsel %vm95_vm2, %v451_v60, %v456_v56 }
  0xb0   :  { %v466_v1 = vunpack.i.h.bf16 %v464_v62  ;;  %v465_v2 = vunpack.i.l.bf16 %v464_v62  ;;  %v459_v3 = vpop.permute.xlu0 %458  ;;  %v392_v4 = vpack.c.bf16 %v257_v0, %v256_v63 }
  0xb1   :  { %v461_v5 = vunpack.i.h.bf16 %v459_v3  ;;  %v460_v6 = vunpack.i.l.bf16 %v459_v3 }
  0xb2   :  { %393 = vmatprep.subr.bf16.mxu1 %v392_v4  ;;  %v244_v7 = vsel %vm82_vm3, %v465_v2, %v450_v61  ;;  %v245_v8 = vsel %vm82_vm3, %v466_v1, %v451_v60 }
  0xb3   :  { %v83_v9 = vsel %vm82_vm3, %v460_v6, %v440_v52  ;;  %v84_v10 = vsel %vm82_vm3, %v461_v5, %v441_v51  ;;  %v394_v11 = vpack.c.bf16 %v245_v8, %v244_v7 }
  0xb4   :  { %v382_v12 = vpack.c.bf16 %v84_v10, %v83_v9 }
  0xb5   :  { %395 = vmatpush1.bf16.msra.mxu1 %v394_v11 }
  0xb6   :  { %383 = vmatpush1.bf16.msra.mxu0 %v382_v12 }
  0xb8   :  { %363 = vmatmul.mubr.msk.f32.vlgmr.msra.gmra.mrb[0].mxu1 %vm98_vm4, %v39_v13 }
  0xb9   :  { %360 = vmatmul.mubr.msk.f32.vlgmr.msra.gmra.mrb[0].mxu0 %vm98_vm4, %v39_v13  ;;  %328 = vmatprep.mubr.f32.mxu1 %v549_v16 }
  0xba   :  { %178 = vmatprep.mubr.f32.mxu0 %v549_v16 }
  0xbc   :  { %364 = vmatmul.mubr.msk.f32.gmra.mrb[2].mxu1 %vm98_vm4, %v40_v14 }
  0xbd   :  { %361 = vmatmul.mubr.msk.f32.gmra.mrb[2].mxu0 %vm98_vm4, %v40_v14  ;;  %334 = vmatprep.mubr.f32.mxu1 %v549_v16 }
  0xbe   :  { %184 = vmatprep.mubr.f32.mxu0 %v549_v16 }
  0xc0   :  { %365 = vmatmul.mubr.msk.f32.gmra.mrb[4].mxu1 %vm98_vm4, %v41_v15 }
  0xc1   :  { %362 = vmatmul.mubr.msk.f32.gmra.mrb[4].mxu0 %vm98_vm4, %v41_v15 }
 0x18b   :  { %v324_v17 = vpop.f32.mrb[0].mxu1 }
 0x18c   :  { %v174_v18 = vpop.f32.mrb[0].mxu0  ;;  %467 = vtanh.f32 %v324_v17  ;;  %v326_v19 = vpop.f32.mrb[1].mxu1 }
 0x18d   :  { %469 = vtanh.f32 %v174_v18  ;;  %v176_v20 = vpop.f32.mrb[1].mxu0 }
 0x18e   :  { %471 = vtanh.f32 %v176_v20 }
 0x18f   :  { %473 = vtanh.f32 %v326_v19  ;;  %v330_v21 = vpop.f32.mrb[2].mxu1 }
 0x190   :  { %v180_v22 = vpop.f32.mrb[2].mxu0  ;;  %475 = vtanh.f32 %v330_v21  ;;  %v332_v23 = vpop.f32.mrb[3].mxu1 }
 0x191   :  { %477 = vtanh.f32 %v180_v22  ;;  %v182_v24 = vpop.f32.mrb[3].mxu0 }
 0x192   :  { %479 = vtanh.f32 %v182_v24 }
 0x193   :  { %481 = vtanh.f32 %v332_v23  ;;  %v336_v25 = vpop.f32.mrb[4].mxu1 }
 0x194   :  { %v186_v16 = vpop.f32.mrb[4].mxu0  ;;  %483 = vtanh.f32 %v336_v25  ;;  %v338_v26 = vpop.f32.mrb[5].mxu1 }
 0x195   :  { %485 = vtanh.f32 %v186_v16  ;;  %v188_v27 = vpop.f32.mrb[5].mxu0 }
 0x196   :  { %v468_v28 = vpop.eup %467  ;;  %487 = vtanh.f32 %v188_v27 }
 0x197   :  { %v470_v29 = vpop.eup %469  ;;  %366 = vst [vmem:[%s641_s2 + $0x30] sm:$0xff] %v468_v28  ;;  %489 = vtanh.f32 %v338_v26 }
 0x198   :  { %v472_v30 = vpop.eup %471  ;;  %197 = vst [vmem:[%s641_s2] sm:$0xff] %v470_v29 }
 0x199   :  { %v474_v31 = vpop.eup %473  ;;  %199 = vst.msk [vmem:[%s641_s2 + $0x8] sm:$0xff] %vm198_vm5, %v472_v30 }
 0x19a   :  { %v476_v32 = vpop.eup %475  ;;  %367 = vst.msk [vmem:[%s641_s2 + $0x38] sm:$0xff] %vm198_vm5, %v474_v31 }
 0x19b   :  { %v478_v33 = vpop.eup %477  ;;  %368 = vst [vmem:[%s641_s2 + $0x40] sm:$0xff] %v476_v32 }
 0x19c   :  { %v480_v34 = vpop.eup %479  ;;  %200 = vst [vmem:[%s641_s2 + $0x10] sm:$0xff] %v478_v33 }
 0x19d   :  { %v482_v35 = vpop.eup %481  ;;  %201 = vst.msk [vmem:[%s641_s2 + $0x18] sm:$0xff] %vm198_vm5, %v480_v34 }
 0x19e   :  { %v484_v36 = vpop.eup %483  ;;  %369 = vst.msk [vmem:[%s641_s2 + $0x48] sm:$0xff] %vm198_vm5, %v482_v35 }
 0x19f   :  { %v486_v37 = vpop.eup %485  ;;  %370 = vst [vmem:[%s641_s2 + $0x50] sm:$0xf] %v484_v36 }
 0x1a0   :  { %v488_v38 = vpop.eup %487  ;;  %202 = vst [vmem:[%s641_s2 + $0x20] sm:$0xf] %v486_v37 }
 0x1a1   :  { %v490_v39 = vpop.eup %489  ;;  %204 = vst.msk [vmem:[%s641_s2 + $0x28] sm:$0xf] %vm203_vm6, %v488_v38 }
 0x1a2   :  { %371 = vst.msk [vmem:[%s641_s2 + $0x58] sm:$0xf] %vm203_vm6, %v490_v39 }
 0x1a3   :  { %358 = vsyncpa [#allocation3], 1 }
 0x1a4   :  { %359 = vsyncpa [#allocation5], 1 }

</bundles_post_ra>
